<compile_context>
chip_gen: v6e
topology: v6e:2x2x1
jax: 0.10.0
libtpu: 0.0.40
codegen_flags: <defaults>
</compile_context>

<pallas_src>
import functools

import jax
import jax.numpy as jnp
import numpy as np
from jax.experimental import pallas as pl
from jax.experimental.pallas import tpu as pltpu

QMIN = -128.0  # int8 fake-quant range
QMAX = 127.0


def _clamp_round(x, scale, zp):
    # nni 'clamp_round': q = clamp(round(x / scale + zp), qmin, qmax); dq = (q - zp) * scale
    # True division (not reciprocal-multiply) to match nni rounding at tie boundaries.
    q = jnp.clip(jnp.round(x / scale + zp), QMIN, QMAX)
    return (q - zp) * scale


# ---------------------------------------------------------------------------
# patch_inputs: one-shot fake-quant of `_input_0`, emitted as compute_dtype (bf16 by default)
# ---------------------------------------------------------------------------
def _input_quant_kernel(qp_ref, x_ref, xq_ref):
    # qp_ref (SMEM, f32[2]): [in_scale, in_zp]
    xq_ref[...] = _clamp_round(x_ref[...], qp_ref[0], qp_ref[1]).astype(xq_ref.dtype)


def fake_quant_input(x, in_scale, in_zp, *, compute_dtype=jnp.bfloat16, tm=256):
    B, IN = x.shape
    tm = min(tm, B)
    assert B % tm == 0, "tile size must divide batch"
    qp = jnp.array([in_scale, in_zp], dtype=jnp.float32)
    return pl.pallas_call(
        _input_quant_kernel,
        out_shape=jax.ShapeDtypeStruct((B, IN), compute_dtype),
        grid_spec=pltpu.PrefetchScalarGridSpec(
            num_scalar_prefetch=0,
            grid=(B // tm,),
            in_specs=[
                pl.BlockSpec(memory_space=pltpu.MemorySpace.SMEM),   # [in_scale, in_zp]
                pl.BlockSpec((tm, IN), lambda i: (i, 0)),            # x rows
            ],
            out_specs=pl.BlockSpec((tm, IN), lambda i: (i, 0)),
        ),
        compiler_params=pltpu.CompilerParams(
            dimension_semantics=("parallel",)),
    )(qp, x)


# ---------------------------------------------------------------------------
# patch_params: done once, outside the per-forward path (static across forwards)
# ---------------------------------------------------------------------------
def prepare_wrapper_params(weight, mask, bias, *, compute_dtype=jnp.bfloat16):
    """Fold the pruning mask ('mul' apply) into the weight, pre-transpose to [IN, OUT],
    cast to the MXU streaming dtype, and reshape bias to [1, OUT]. In a real deployment
    these are computed once when the wrapper/mask is updated and cached."""
    wt = (weight * mask.astype(weight.dtype)).T.astype(compute_dtype)   # [IN, OUT]
    bias2d = bias.reshape(1, -1).astype(jnp.float32)                    # [1, OUT]
    return wt, bias2d


# ---------------------------------------------------------------------------
# module_forward (Linear) + patch_outputs, tiled grid (B, OUT, IN), k-innermost accumulation
# ---------------------------------------------------------------------------
def _wrapper_linear_kernel(qp_ref, xq_ref, wt_ref, b_ref, o_ref, acc_ref):
    # qp_ref (SMEM, f32[2]): [out_scale, out_zp]
    k = pl.program_id(2)

    @pl.when(k == 0)
    def _():
        acc_ref[...] = jnp.zeros_like(acc_ref)

    # Linear: weight already masked + transposed to [IN, OUT] -> plain [tm,tk] @ [tk,tn]
    # MXU contraction with f32 accumulation in the VMEM scratch.
    acc_ref[...] += jax.lax.dot_general(
        xq_ref[...], wt_ref[...], (((1,), (0,)), ((), ())),
        preferred_element_type=jnp.float32)

    # Epilogue on the last k step only: bias + output fake-quant, lane-dense store.
    @pl.when(k == pl.num_programs(2) - 1)
    def _():
        y = acc_ref[...] + b_ref[...]                                   # b_ref is [1, tn]
        o_ref[...] = _clamp_round(y, qp_ref[0], qp_ref[1]).astype(o_ref.dtype)


def module_wrapper_forward(xq, wt, bias2d, out_scale, out_zp, *,
                           tm=128, tn=512, tk=1024, out_dtype=jnp.float32):
    """xq: [B, IN] pre-fake-quantized activations (compute dtype),
       wt: [IN, OUT] pre-masked/pre-transposed weight, bias2d: [1, OUT]."""
    B, IN = xq.shape
    OUT = wt.shape[1]
    tm = min(tm, B)
    tn = min(tn, OUT)
    tk = min(tk, IN)
    assert B % tm == 0 and OUT % tn == 0 and IN % tk == 0, "tile sizes must divide shapes"
    # Keep tn a multiple of 128 (lane-dense, unmasked output stores). On v7x prefer OUT/tn >= 2
    # so both TensorCores get work on the 'parallel' j axis.
    assert tn % 128 == 0 or tn == OUT, "tn should stay lane-dense"

    qp = jnp.array([out_scale, out_zp], dtype=jnp.float32)
    grid = (B // tm, OUT // tn, IN // tk)

    return pl.pallas_call(
        _wrapper_linear_kernel,
        out_shape=jax.ShapeDtypeStruct((B, OUT), out_dtype),
        grid_spec=pltpu.PrefetchScalarGridSpec(
            num_scalar_prefetch=0,
            grid=grid,
            in_specs=[
                pl.BlockSpec(memory_space=pltpu.MemorySpace.SMEM),   # [out_scale, out_zp]
                pl.BlockSpec((tm, tk), lambda i, j, k: (i, k)),      # x_q (bf16)
                pl.BlockSpec((tk, tn), lambda i, j, k: (k, j)),      # (W * mask)^T (bf16)
                pl.BlockSpec((1, tn), lambda i, j, k: (0, j)),       # bias
            ],
            out_specs=pl.BlockSpec((tm, tn), lambda i, j, k: (i, j)),
            scratch_shapes=[pltpu.VMEM((tm, tn), jnp.float32)],
        ),
        compiler_params=pltpu.CompilerParams(
            dimension_semantics=("parallel", "parallel", "arbitrary"),
            vmem_limit_bytes=48 * 1024 * 1024),   # above the 16/32 MiB scoped default, < v7x 64 MiB
    )(qp, xq, wt, bias2d)


def module_wrapper(x, weight, mask, bias, in_scale, in_zp, out_scale, out_zp, *,
                   compute_dtype=jnp.bfloat16, out_dtype=jnp.float32,
                   tm=128, tn=512, tk=1024):
    """Full ModuleWrapper.forward: input quant -> masked Linear -> output quant."""
    # In a real deployment prepare_wrapper_params() is cached across forwards.
    wt, bias2d = prepare_wrapper_params(weight, mask, bias, compute_dtype=compute_dtype)
    xq = fake_quant_input(x, in_scale, in_zp, compute_dtype=compute_dtype)
    return module_wrapper_forward(xq, wt, bias2d, out_scale, out_zp,
                                  tm=tm, tn=tn, tk=tk, out_dtype=out_dtype)
    # TODO(synk): on v5e/v6e a true int8 MXU path (int8 q, int8 W, scale/zp folded into the
    # epilogue) would halve compute and quarter weight traffic; not valid on v7x (fp8-only MXU).


# ---------------------------------------------------------------------------
# Reference + check
# ---------------------------------------------------------------------------
def reference_forward(x, weight, mask, bias, in_scale, in_zp, out_scale, out_zp,
                      compute_dtype=jnp.bfloat16):
    xq = _clamp_round(x, in_scale, in_zp).astype(compute_dtype)
    wt = (weight * mask).T.astype(compute_dtype)
    y = jnp.dot(xq, wt, preferred_element_type=jnp.float32) + bias
    return _clamp_round(y, out_scale, out_zp)


def _check(out, ref, out_scale, name):
    out = np.asarray(out, dtype=np.float64)
    ref = np.asarray(ref, dtype=np.float64)
    diff = np.abs(out - ref)
    # Post-quantization, accumulation-order differences can at most snap an element to the
    # adjacent quant level; require (a) never more than one level off, (b) almost all exact.
    assert np.all(diff <= out_scale + 1e-5), f"{name}: max diff {diff.max()} exceeds one quant step"
    assert np.mean(diff > 1e-5) < 0.01, f"{name}: too many non-exact elements ({np.mean(diff > 1e-5)})"


if __name__ == "__main__":
    key = jax.random.PRNGKey(0)
    k1, k2, k3, k4 = jax.random.split(key, 4)

    B, IN, OUT = 8, 256, 256  # small shapes implied by a wrapped nn.Linear(IN, OUT)

    x = jax.random.normal(k1, (B, IN), dtype=jnp.float32)
    weight = jax.random.normal(k2, (OUT, IN), dtype=jnp.float32) * 0.1
    bias = jax.random.normal(k3, (OUT,), dtype=jnp.float32) * 0.1
    # deterministic pruning mask (0/1), ~50% sparsity
    mask = (jax.random.uniform(k4, (OUT, IN)) > 0.5).astype(jnp.float32)

    # deterministic per-tensor quantization params (scale, zero_point)
    in_scale, in_zp = 0.05, 0.0
    out_scale, out_zp = 0.02, 3.0

    # default bf16 streaming path (f32 accumulation); small tiles to exercise the k-accumulation
    # pipeline and keep >=2 blocks on the parallel j axis (megacore / v7x dual-TC friendly)
    out_bf16 = module_wrapper(x, weight, mask, bias, in_scale, in_zp, out_scale, out_zp,
                              compute_dtype=jnp.bfloat16, tm=8, tn=128, tk=128)
    out_bf16 = jax.block_until_ready(out_bf16)
    ref_bf16 = reference_forward(x, weight, mask, bias, in_scale, in_zp, out_scale, out_zp,
                                 compute_dtype=jnp.bfloat16)
    _check(out_bf16, ref_bf16, out_scale, "bf16")

    # explicit f32 opt-in path (exact wrapper semantics, no bf16 casts)
    out_f32 = module_wrapper(x, weight, mask, bias, in_scale, in_zp, out_scale, out_zp,
                             compute_dtype=jnp.float32, tm=8, tn=128, tk=128)
    out_f32 = jax.block_until_ready(out_f32)
    ref_f32 = reference_forward(x, weight, mask, bias, in_scale, in_zp, out_scale, out_zp,
                                compute_dtype=jnp.float32)
    _check(out_f32, ref_f32, out_scale, "f32")

    # TODO(synk): the wrapper's track_funcs (shape tracking) and distillation hidden_state capture
    # are host-side bookkeeping with no tensor compute; they are not represented in the kernel.
    print("KERNEL_OK")
</pallas_src>

<mosaic_0001>
module attributes {stable_mosaic.version = 11 : i64} {
  func.func @_input_quant_kernel(%arg0: i32, %arg1: memref<2xf32, #tpu.memory_space<smem>>, %arg2: memref<8x256xf32, #tpu.memory_space<vmem>>, %arg3: memref<8x256xbf16, #tpu.memory_space<vmem>>) attributes {dimension_semantics = [#tpu.dimension_semantics<parallel>], iteration_bounds = array<i64: 1>, scalar_prefetch = 0 : i64, scratch_operands = 0 : i64, tpu.core_type = #tpu.core_type<tc>, window_params = [{transform_indices = @transform_0, window_bounds = array<i64: 2>}, {transform_indices = @transform_1, window_bounds = array<i64: 8, 256>}, {transform_indices = @transform_2, window_bounds = array<i64: 8, 256>}]} {
    %c0 = arith.constant 0 : index
    %c0_0 = arith.constant 0 : index
    %0 = vector.load %arg2[%c0, %c0_0] : memref<8x256xf32, #tpu.memory_space<vmem>>, vector<8x256xf32>
    %c0_1 = arith.constant 0 : index
    %1 = memref.load %arg1[%c0_1] : memref<2xf32, #tpu.memory_space<smem>>
    %c1 = arith.constant 1 : index
    %2 = memref.load %arg1[%c1] : memref<2xf32, #tpu.memory_space<smem>>
    %3 = vector.broadcast %1 : f32 to vector<8x256xf32>
    %4 = arith.divf %0, %3 : vector<8x256xf32>
    %5 = vector.broadcast %2 : f32 to vector<8x256xf32>
    %6 = arith.addf %4, %5 : vector<8x256xf32>
    %7 = math.roundeven %6 : vector<8x256xf32>
    %cst = arith.constant -1.280000e+02 : f32
    %cst_2 = arith.constant 1.270000e+02 : f32
    %8 = vector.broadcast %cst : f32 to vector<8x256xf32>
    %9 = arith.maximumf %8, %7 : vector<8x256xf32>
    %10 = vector.broadcast %cst_2 : f32 to vector<8x256xf32>
    %11 = arith.minimumf %10, %9 : vector<8x256xf32>
    %12 = vector.broadcast %2 : f32 to vector<8x256xf32>
    %13 = arith.subf %11, %12 : vector<8x256xf32>
    %14 = vector.broadcast %1 : f32 to vector<8x256xf32>
    %15 = arith.mulf %13, %14 : vector<8x256xf32>
    %16 = arith.truncf %15 : vector<8x256xf32> to vector<8x256xbf16>
    %c0_3 = arith.constant 0 : index
    %c0_4 = arith.constant 0 : index
    %17 = vector.load %arg3[%c0_3, %c0_4] : memref<8x256xbf16, #tpu.memory_space<vmem>>, vector<8x256xbf16>
    tpu.vector_store %arg3[%c0_3, %c0_4], %16 {strides = array<i32>} : memref<8x256xbf16, #tpu.memory_space<vmem>>, vector<8x256xbf16>,
    return
  }
  func.func @transform_0(%arg0: i32) -> i32 {
    %c0_i32 = arith.constant 0 : i32
    %c0_i32_0 = arith.constant 0 : i32
    return %c0_i32 : i32
  }
  func.func @transform_1(%arg0: i32) -> (i32, i32) {
    %c0_i32 = arith.constant 0 : i32
    %c0_i32_0 = arith.constant 0 : i32
    return %arg0, %c0_i32 : i32, i32
  }
  func.func @transform_2(%arg0: i32) -> (i32, i32) {
    %c0_i32 = arith.constant 0 : i32
    %c0_i32_0 = arith.constant 0 : i32
    return %arg0, %c0_i32 : i32, i32
  }
}

</mosaic_0001>

<bundles_post_ra>
// kernel: tpu_custom_call.1
= control target key start
LH: loop header
LB: loop body
LE: loop exit
PB: predicated region body
PF: predicated region fallthrough
CT: control target
= control target key end

     0   :  { %7 = vsyncpa [#allocation5], 0  ;;  %s186_s0 = inlined_call_operand.hbm [shape: f32[2], index: 0, kind: input, shape index: {}]   ;;  %s187_s1 = inlined_call_operand.hbm [shape: f32[8,256], index: 1, kind: input, shape index: {}]   ;;  %s188_s2 = inlined_call_operand.hbm [shape: bf16[8,256], index: 2, kind: output, shape index: {}]  }
   0x1   :  { %8 = vsyncpa [#allocation3], 0 }
   0x2   :  { %9 = vsyncpa [#allocation4], 0  ;;  %s159_s9 = smov [#allocation2]   ;;  %s160_s12 = smov [#allocation6]  }
   0x3   :  { %17 = dma.hbm_to_smem %s186_s0, 16, %s159_s9, [#allocation5]  }
   0x4   :  { %s24_s13 = sshll.u32 %s160_s12, 4  ;;  %s25_s13 = int_to_ptr.vmem [resolvable:$true] %s24_s13 }
   0x5   :  { %s121_s14 = scalar_lea.vmem %s25_s13, 256  ;;  %p126_p1 = scmp.lt.s32.totalorder %s25_s13, %s25_s13 }
   0x6   :  { %p122_p0 = scmp.ne.s32.totalorder %s25_s13, %s121_s14  ;;  %p127_p2 = scmp.lt.s32.totalorder %s121_s14, %s121_s14 }
   0x8   :  { %p128_p3 = por %p127_p2, %p126_p1 }
   0xa   :  { %p129_p4 = pnand %p128_p3, %p122_p0 }
   0xc   :  { %132 = shalt.err (!%p129_p4)
}
   0xd   :  { %27 = dma.hbm_to_vmem [thread:$0]  %s187_s1, 256, %s25_s13, [#allocation3]  }
   0xe   :  { %153 = dma.done.wait [#allocation5], 16  }
   0xf   :  { %154 = vsyncadd [#allocation5], 4294967280 }
  0x10   :  { %155 = dma.done.wait [#allocation3], 256  }
  0x11   :  { %156 = vsyncadd [#allocation3], 4294967040 }
  0x12   :  { %34 = sfence }
  0x13   :  { %s37_s0 = sld [smem:[#allocation2]]  ;;  %v35_v1 = vld [vmem:[#allocation6] sm:$0xff]  ;;  %v36_v2 = vld [vmem:[#allocation6 + $0x8] sm:$0xff]  ;;  %s161_s1 = smov [#allocation7]  }
  0x14   :  { %s81_s17 = sld [smem:[#allocation2 + $0x1]]  ;;  %s71_s18 = sshll.u32 %s161_s1, 4  ;;  %s72_s18 = int_to_ptr.vmem [resolvable:$true] %s71_s18 }
  0x15   :  { %s133_s19 = scalar_lea.vmem %s72_s18, 128  ;;  %p138_p6 = scmp.lt.s32.totalorder %s72_s18, %s72_s18 }
  0x16   :  { %p134_p5 = scmp.ne.s32.totalorder %s72_s18, %s133_s19  ;;  %p139_p7 = scmp.lt.s32.totalorder %s133_s19, %s133_s19 }
  0x18   :  { %p140_p8 = por %p139_p7, %p138_p6 }
  0x19   :  { %v39_v0 = vstv %s37_s0 }
  0x1a   :  { %103 = vrcp.f32 %v39_v0  ;;  %v43_v4 = vstv %s81_s17  ;;  %p141_p9 = pnand %p140_p8, %p134_p5 }
  0x27   :  { %v104_v3 = vpop.eup %103 }
  0x28   :  { %v41_v5 = vmul.f32 %v104_v3, %v35_v1  ;;  %v42_v6 = vmul.f32 %v104_v3, %v36_v2 }
  0x2a   :  { %v44_v7 = vadd.f32 %v43_v4, %v41_v5  ;;  %v45_v8 = vadd.f32 %v43_v4, %v42_v6 }
  0x2c   :  { %v86_v9 = vcvt.f32.s32 %v44_v7  ;;  %v84_v10 = vand.u32 2147483647, %v44_v7  ;;  %v94_v11 = vcvt.f32.s32 %v45_v8  ;;  %v89_v13 = vand.u32 2147483648, %v44_v7 }
  0x2d   :  { %v92_v14 = vand.u32 2147483647, %v45_v8  ;;  %v97_v16 = vand.u32 2147483648, %v45_v8 }
  0x2e   :  { %v87_v12 = vcvt.s32.f32 %v86_v9  ;;  %v95_v15 = vcvt.s32.f32 %v94_v11  ;;  %vm85_vm0 = vcmp.lt.f32.partialorder %v84_v10, 8388608.0 }
  0x2f   :  { %vm93_vm1 = vcmp.lt.f32.partialorder %v92_v14, 8388608.0 }
  0x30   :  { %v88_v17 = vand.u32 2147483647, %v87_v12  ;;  %v96_v18 = vand.u32 2147483647, %v95_v15 }
  0x32   :  { %v90_v19 = vor.u32 %v89_v13, %v88_v17  ;;  %v98_v20 = vor.u32 %v97_v16, %v96_v18 }
  0x34   :  { %v91_v21 = vsel %vm85_vm0, %v90_v19, %v44_v7  ;;  %v99_v22 = vsel %vm93_vm1, %v98_v20, %v45_v8 }
  0x35   :  { %v48_v23 = vmax.f32 %v91_v21, -128.0  ;;  %v49_v24 = vmax.f32 %v99_v22, -128.0 }
  0x37   :  { %v50_v25 = vmin.f32 %v48_v23, 127.0  ;;  %v51_v26 = vmin.f32 %v49_v24, 127.0 }
  0x39   :  { %v52_v27 = vsub.f32 %v50_v25, %v43_v4  ;;  %v53_v28 = vsub.f32 %v51_v26, %v43_v4 }
  0x3b   :  { %v54_v29 = vmul.f32 %v52_v27, %v39_v0  ;;  %v55_v30 = vmul.f32 %v53_v28, %v39_v0 }
  0x3d   :  { %v83_v31 = vpack.c.bf16 %v55_v30, %v54_v29 }
  0x3f   :  { %64 = vst [vmem:[#allocation7] sm:$0xff] %v83_v31 }
  0x40   :  { %144 = shalt.err (!%p141_p9)
}
  0x41   :  { %74 = dma.vmem_to_hbm [thread:$0]  %s72_s18, 128, %s188_s2, [#allocation4]  }
  0x42   :  { %157 = dma.done.wait [#allocation4], 128  }
  0x43   :  { %158 = vsyncadd [#allocation4], 4294967168 }
  0x44   :  { %78 = vsyncpa [#allocation3], 1 }
  0x45   :  { %79 = vsyncpa [#allocation4], 1 }
  0x46   :  { %80 = vsyncpa [#allocation5], 1 }

</bundles_post_ra>
